<compile_context>
chip_gen: v6e
topology: v6e:2x2x1
jax: 0.10.0
libtpu: 0.0.40
codegen_flags: <defaults>
</compile_context>

<pallas_src>
import jax
import jax.numpy as jnp
from jax.experimental import pallas as pl
from jax.experimental.pallas import tpu as pltpu


def _pos_emb_ln_kernel(feat_ref, pos_ref, gb_ref, out_ref):
    # feat_ref: (S, TB, F) activations (batch tile)
    # pos_ref:  (S, F)     position table (VMEM-resident across grid steps)
    # gb_ref:   (2, F)     packed [gamma; beta], float32 (resident)
    x = feat_ref[...].astype(jnp.float32) + pos_ref[...].astype(jnp.float32)[:, None, :]

    # Fused LayerNorm statistics: one pass over x (biased var, like nn.LayerNorm).
    inv_f = 1.0 / x.shape[-1]
    s1 = jnp.sum(x, axis=-1, keepdims=True)
    s2 = jnp.sum(x * x, axis=-1, keepdims=True)
    mean = s1 * inv_f
    var = s2 * inv_f - mean * mean
    inv = jax.lax.rsqrt(var + 1e-5)

    gamma = gb_ref[0, :]
    beta = gb_ref[1, :]
    out_ref[...] = ((x - mean) * inv * gamma + beta).astype(out_ref.dtype)


def _pick_batch_tile(S, B, F, in_isz, out_isz, vmem_budget_bytes):
    """Batch-axis tile so double-buffered (feat + out) tiles fit the VMEM budget."""
    bytes_per_b_row = 2 * S * F * (in_isz + out_isz)          # 2x = double buffering
    tb = max(1, vmem_budget_bytes // bytes_per_b_row)
    if tb >= B:
        tb = B
        # Keep >= 2 grid steps on mid/large problems so both v7x TCs get work.
        if B >= 16 and S * B * F * in_isz > (1 << 20):
            tb = max(8, (pl.cdiv(B, 2) // 8) * 8)
    else:
        tb = max(8, (tb // 8) * 8)   # (8,128): 2nd-to-last block dim must be %8 (or == B)
        tb = min(tb, B)
    return int(tb)


def position_embeddings_forward(features, pos_weight, gamma, beta, *,
                                vmem_budget_bytes=12 * 1024 * 1024):
    """features: (S, B, F); pos_weight: (S, F); gamma, beta: (F,). Dropout = identity (eval)."""
    S, B, F = features.shape
    out_dtype = features.dtype
    in_isz = jnp.dtype(features.dtype).itemsize
    out_isz = jnp.dtype(out_dtype).itemsize

    tb = _pick_batch_tile(S, B, F, in_isz, out_isz, vmem_budget_bytes)
    grid = (pl.cdiv(B, tb),)

    # Packed affine params, kept in float32 (tiny, resident; no reason to downcast).
    gb = jnp.stack([gamma, beta]).astype(jnp.float32)          # (2, F)

    # VMEM actually needed: double-buffered feat+out tiles + resident pos/gb.
    vmem_bytes = (2 * S * tb * F * (in_isz + out_isz)
                  + 2 * S * F * in_isz
                  + 2 * 2 * F * 4)
    vmem_limit = int(min(48 * 1024 * 1024,
                         max(vmem_bytes + 4 * 1024 * 1024, 16 * 1024 * 1024)))

    return pl.pallas_call(
        _pos_emb_ln_kernel,
        out_shape=jax.ShapeDtypeStruct((S, B, F), out_dtype),
        grid_spec=pltpu.PrefetchScalarGridSpec(
            num_scalar_prefetch=0,
            grid=grid,
            in_specs=[
                pl.BlockSpec((S, tb, F), lambda j: (0, j, 0)),  # feature batch-tile
                pl.BlockSpec((S, F), lambda j: (0, 0)),         # pos table, resident
                pl.BlockSpec((2, F), lambda j: (0, 0)),         # packed gamma/beta, resident
            ],
            out_specs=pl.BlockSpec((S, tb, F), lambda j: (0, j, 0)),
        ),
        compiler_params=pltpu.CompilerParams(
            dimension_semantics=("parallel",),                  # 2-TC sharding on v7x at scale
            vmem_limit_bytes=vmem_limit,
        ),
    )(features, pos_weight, gb)


def position_embeddings_ref(features, pos_weight, gamma, beta):
    # Pure-JAX reference (mirrors the PyTorch forward, dropout in eval mode).
    e = features + pos_weight[:, None, :]
    mean = jnp.mean(e, axis=-1, keepdims=True)
    var = jnp.mean((e - mean) ** 2, axis=-1, keepdims=True)
    return (e - mean) * jax.lax.rsqrt(var + 1e-5) * gamma + beta


if __name__ == "__main__":
    # Module config: nfeat=32, seq_length=8, dropout=0.1 (inactive in eval).
    S, B, F = 8, 2, 32

    key = jax.random.PRNGKey(0)
    k_feat, k_pos = jax.random.split(key)

    features = jax.random.normal(k_feat, (S, B, F), dtype=jnp.float32)
    # nn.Embedding default init ~ N(0, 1)
    pos_weight = jax.random.normal(k_pos, (S, F), dtype=jnp.float32)
    # nn.LayerNorm default init: weight=1, bias=0
    gamma = jnp.ones((F,), dtype=jnp.float32)
    beta = jnp.zeros((F,), dtype=jnp.float32)

    out = position_embeddings_forward(features, pos_weight, gamma, beta)
    out = jax.block_until_ready(out)

    ref = position_embeddings_ref(features, pos_weight, gamma, beta)
    assert out.shape == (S, B, F)
    assert jnp.allclose(out, ref, atol=2e-5, rtol=2e-5), "mismatch vs reference"

    print("KERNEL_OK")
</pallas_src>

<mosaic_0001>
module attributes {stable_mosaic.version = 11 : i64} {
  func.func @_pos_emb_ln_kernel(%arg0: i32, %arg1: memref<8x2x32xf32, #tpu.memory_space<vmem>>, %arg2: memref<8x32xf32, #tpu.memory_space<vmem>>, %arg3: memref<2x32xf32, #tpu.memory_space<vmem>>, %arg4: memref<8x2x32xf32, #tpu.memory_space<vmem>>) attributes {dimension_semantics = [#tpu.dimension_semantics<parallel>], iteration_bounds = array<i64: 1>, scalar_prefetch = 0 : i64, scratch_operands = 0 : i64, tpu.core_type = #tpu.core_type<tc>, window_params = [{transform_indices = @transform_0, window_bounds = array<i64: 8, 2, 32>}, {pipeline_mode = #tpu.pipeline_mode<synchronous>, transform_indices = @transform_1, window_bounds = array<i64: 8, 32>}, {pipeline_mode = #tpu.pipeline_mode<synchronous>, transform_indices = @transform_2, window_bounds = array<i64: 2, 32>}, {transform_indices = @transform_3, window_bounds = array<i64: 8, 2, 32>}]} {
    %c0 = arith.constant 0 : index
    %c0_0 = arith.constant 0 : index
    %c0_1 = arith.constant 0 : index
    %0 = vector.load %arg1[%c0, %c0_0, %c0_1] : memref<8x2x32xf32, #tpu.memory_space<vmem>>, vector<8x2x32xf32>
    %c0_2 = arith.constant 0 : index
    %c0_3 = arith.constant 0 : index
    %1 = vector.load %arg2[%c0_2, %c0_3] : memref<8x32xf32, #tpu.memory_space<vmem>>, vector<8x32xf32>
    %2 = vector.shape_cast %1 : vector<8x32xf32> to vector<8x1x32xf32>
    %3 = vector.broadcast %2 : vector<8x1x32xf32> to vector<8x2x32xf32>
    %4 = arith.addf %0, %3 : vector<8x2x32xf32>
    %cst = arith.constant dense<0.000000e+00> : vector<8x2xf32>
    %5 = vector.multi_reduction <add>, %4, %cst [2] : vector<8x2x32xf32> to vector<8x2xf32>
    %6 = vector.shape_cast %5 : vector<8x2xf32> to vector<8x2x1xf32>
    %7 = arith.mulf %4, %4 : vector<8x2x32xf32>
    %cst_4 = arith.constant dense<0.000000e+00> : vector<8x2xf32>
    %8 = vector.multi_reduction <add>, %7, %cst_4 [2] : vector<8x2x32xf32> to vector<8x2xf32>
    %9 = vector.shape_cast %8 : vector<8x2xf32> to vector<8x2x1xf32>
    %cst_5 = arith.constant 3.125000e-02 : f32
    %10 = vector.broadcast %cst_5 : f32 to vector<8x2x1xf32>
    %11 = arith.mulf %6, %10 : vector<8x2x1xf32>
    %cst_6 = arith.constant 3.125000e-02 : f32
    %12 = vector.broadcast %cst_6 : f32 to vector<8x2x1xf32>
    %13 = arith.mulf %9, %12 : vector<8x2x1xf32>
    %14 = arith.mulf %11, %11 : vector<8x2x1xf32>
    %15 = arith.subf %13, %14 : vector<8x2x1xf32>
    %cst_7 = arith.constant 9.99999974E-6 : f32
    %16 = vector.broadcast %cst_7 : f32 to vector<8x2x1xf32>
    %17 = arith.addf %15, %16 : vector<8x2x1xf32>
    %18 = math.rsqrt %17 : vector<8x2x1xf32>
    %c0_8 = arith.constant 0 : index
    %c0_9 = arith.constant 0 : index
    %19 = vector.load %arg3[%c0_8, %c0_9] : memref<2x32xf32, #tpu.memory_space<vmem>>, vector<1x32xf32>
    %20 = vector.shape_cast %19 : vector<1x32xf32> to vector<32xf32>
    %c1 = arith.constant 1 : index
    %c0_10 = arith.constant 0 : index
    %21 = vector.load %arg3[%c1, %c0_10] : memref<2x32xf32, #tpu.memory_space<vmem>>, vector<1x32xf32>
    %22 = vector.shape_cast %21 : vector<1x32xf32> to vector<32xf32>
    %23 = vector.broadcast %11 : vector<8x2x1xf32> to vector<8x2x32xf32>
    %24 = arith.subf %4, %23 : vector<8x2x32xf32>
    %25 = vector.broadcast %18 : vector<8x2x1xf32> to vector<8x2x32xf32>
    %26 = arith.mulf %24, %25 : vector<8x2x32xf32>
    %27 = vector.shape_cast %20 : vector<32xf32> to vector<1x1x32xf32>
    %28 = vector.broadcast %27 : vector<1x1x32xf32> to vector<8x2x32xf32>
    %29 = arith.mulf %26, %28 : vector<8x2x32xf32>
    %30 = vector.shape_cast %22 : vector<32xf32> to vector<1x1x32xf32>
    %31 = vector.broadcast %30 : vector<1x1x32xf32> to vector<8x2x32xf32>
    %32 = arith.addf %29, %31 : vector<8x2x32xf32>
    %c0_11 = arith.constant 0 : index
    %c0_12 = arith.constant 0 : index
    %c0_13 = arith.constant 0 : index
    %33 = vector.load %arg4[%c0_11, %c0_12, %c0_13] : memref<8x2x32xf32, #tpu.memory_space<vmem>>, vector<8x2x32xf32>
    tpu.vector_store %arg4[%c0_11, %c0_12, %c0_13], %32 {strides = array<i32>} : memref<8x2x32xf32, #tpu.memory_space<vmem>>, vector<8x2x32xf32>,
    return
  }
  func.func @transform_0(%arg0: i32) -> (i32, i32, i32) {
    %c0_i32 = arith.constant 0 : i32
    %c0_i32_0 = arith.constant 0 : i32
    %c0_i32_1 = arith.constant 0 : i32
    return %c0_i32, %arg0, %c0_i32_0 : i32, i32, i32
  }
  func.func @transform_1(%arg0: i32) -> (i32, i32) {
    %c0_i32 = arith.constant 0 : i32
    %c0_i32_0 = arith.constant 0 : i32
    %c0_i32_1 = arith.constant 0 : i32
    return %c0_i32, %c0_i32_0 : i32, i32
  }
  func.func @transform_2(%arg0: i32) -> (i32, i32) {
    %c0_i32 = arith.constant 0 : i32
    %c0_i32_0 = arith.constant 0 : i32
    %c0_i32_1 = arith.constant 0 : i32
    return %c0_i32, %c0_i32_0 : i32, i32
  }
  func.func @transform_3(%arg0: i32) -> (i32, i32, i32) {
    %c0_i32 = arith.constant 0 : i32
    %c0_i32_0 = arith.constant 0 : i32
    %c0_i32_1 = arith.constant 0 : i32
    return %c0_i32, %arg0, %c0_i32_0 : i32, i32, i32
  }
}

</mosaic_0001>

<bundles_post_ra>
// kernel: tpu_custom_call.1
= control target key start
LH: loop header
LB: loop body
LE: loop exit
PB: predicated region body
PF: predicated region fallthrough
CT: control target
= control target key end

     0   :  { %8 = vsyncpa [#allocation3], 0  ;;  %s566_s0 = inlined_call_operand.hbm [shape: f32[8,2,32], index: 0, kind: input, shape index: {}]   ;;  %s567_s1 = inlined_call_operand.hbm [shape: f32[8,32], index: 1, kind: input, shape index: {}]   ;;  %s568_s2 = inlined_call_operand.vmem [shape: f32[2,32], index: 2, kind: input, shape index: {}]   ;;  %s569_s3 = inlined_call_operand.hbm [shape: f32[8,2,32], index: 3, kind: output, shape index: {}]  }
   0x1   :  { %9 = vsyncpa [#allocation6], 0 }
   0x2   :  { %10 = vsyncpa [#allocation4], 0  ;;  %s412_s12 = smov [#allocation2]  }
   0x3   :  { %s16_s13 = sshll.u32 %s412_s12, 4  ;;  %s17_s13 = int_to_ptr.vmem [resolvable:$true] %s16_s13 }
   0x4   :  { %s354_s14 = scalar_lea.vmem %s17_s13, 256  ;;  %p359_p1 = scmp.lt.s32.totalorder %s17_s13, %s17_s13 }
   0x5   :  { %p355_p0 = scmp.ne.s32.totalorder %s17_s13, %s354_s14  ;;  %p360_p2 = scmp.lt.s32.totalorder %s354_s14, %s354_s14 }
   0x7   :  { %p361_p3 = por %p360_p2, %p359_p1 }
   0x9   :  { %p362_p4 = pnand %p361_p3, %p355_p0 }
   0xb   :  { %365 = shalt.err (!%p362_p4)
}
   0xc   :  { %s413_s15 = smov 32   ;;  %s414_s16 = smov 2  }
   0xd   :  { %22 = dma.hbm_to_vmem [thread:$0]  %s566_s0, 256, %s17_s13, [#allocation3], %s413_s15, %s413_s15, %s414_s16  }
   0xe   :  { %s415_s19 = smov [#allocation5]  }
   0xf   :  { %s29_s20 = sshll.u32 %s415_s19, 4  ;;  %s30_s20 = int_to_ptr.vmem [resolvable:$true] %s29_s20 }
  0x10   :  { %s374_s21 = scalar_lea.vmem %s30_s20, 128  ;;  %p379_p6 = scmp.lt.s32.totalorder %s30_s20, %s30_s20 }
  0x11   :  { %p375_p5 = scmp.ne.s32.totalorder %s30_s20, %s374_s21  ;;  %p380_p7 = scmp.lt.s32.totalorder %s374_s21, %s374_s21 }
  0x13   :  { %p381_p8 = por %p380_p7, %p379_p6 }
  0x15   :  { %p382_p9 = pnand %p381_p8, %p375_p5 }
  0x17   :  { %385 = shalt.err (!%p382_p9)
}
  0x18   :  { %32 = dma.hbm_to_vmem [thread:$0]  %s567_s1, 128, %s30_s20, [#allocation6]  }
  0x19   :  { %406 = dma.done.wait [#allocation3], 256  }
  0x1a   :  { %407 = vsyncadd [#allocation3], 4294967040 }
  0x1b   :  { %408 = dma.done.wait [#allocation6], 128  }
  0x1c   :  { %409 = vsyncadd [#allocation6], 4294967168  ;;  %v55_v0 = vlaneseq  ;;  %v416_v1 = vmov 1966171168   ;;  %v49_v6 = vld [vmem:[#allocation5] sm:$0xff]  ;;  %vm148_vm0 = vcmask 254976  }
  0x1d   :  { %v53_v2 = vunpack.c.l.s4 %v416_v1  ;;  %v51_v7 = vcombine.high %v49_v6, %v49_v6  ;;  %v41_v13 = vld [vmem:[#allocation2] sm:$0x3]  ;;  %v43_v18 = vld [vmem:[#allocation2 + $0x4] sm:$0x3]  ;;  %v42_v19 = vld [vmem:[#allocation2 + $0x2] sm:$0x3] }
  0x1e   :  { %v56_v3 = vshrl.u32 %v55_v0, 7  ;;  %v44_v25 = vld [vmem:[#allocation2 + $0x6] sm:$0x3]  ;;  %v45_v26 = vld [vmem:[#allocation2 + $0x8] sm:$0x3] }
  0x1f   :  { %v54_v4 = vunpack.c.0.s8 %v53_v2  ;;  %v46_v33 = vld [vmem:[#allocation2 + $0xa] sm:$0x3]  ;;  %v47_v46 = vld [vmem:[#allocation2 + $0xc] sm:$0x3]  ;;  %v48_v50 = vld [vmem:[#allocation2 + $0xe] sm:$0x3] }
  0x20   :  { %v102_v9 = vsub.s32 0, %v56_v3 }
  0x21   :  { %v57_v5 = vsub.s32 %v54_v4, %v56_v3 }
  0x23   :  { %v58_v8 = vrot.slane %v49_v6, %v57_v5  ;;  %v65_v12 = vrot.slane %v51_v7, %v57_v5 }
  0x25   :  { %v74_v10 = vrot.slane %v58_v8, %v57_v5  ;;  %v66_v11 = vcombine.high %v58_v8, %v58_v8  ;;  %v81_v17 = vrot.slane %v65_v12, %v57_v5  ;;  %v67_v20 = vcombine.high %v65_v12, %v65_v12 }
  0x27   :  { %v103_v14 = vrot.slane %v74_v10, %v102_v9  ;;  %v96_v15 = vcombine.high %v74_v10, %v74_v10  ;;  %v88_v16 = vrot.slane %v66_v11, %v57_v5  ;;  %v119_v27 = vrot.slane %v81_v17, %v102_v9 }
  0x28   :  { %v95_v28 = vrot.slane %v67_v20, %v57_v5  ;;  %v97_v35 = vcombine.high %v81_v17, %v81_v17 }
  0x29   :  { %v447_v21 = vadd.f32 %v103_v14, %v41_v13  ;;  %v111_v22 = vrot.slane %v96_v15, %v102_v9  ;;  %v107_v23 = vrot.slane %v88_v16, %v102_v9  ;;  %v98_v24 = vcombine.high %v88_v16, %v88_v16 }
  0x2a   :  { %v123_v34 = vrot.slane %v95_v28, %v102_v9  ;;  %v461_v39 = vadd.f32 %v119_v27, %v45_v26  ;;  %v99_v42 = vcombine.high %v95_v28, %v95_v28  ;;  %v127_v45 = vrot.slane %v97_v35, %v102_v9 }
  0x2b   :  { %v149_v29 = vsel %vm148_vm0, %v447_v21, 0.0  ;;  %v451_v30 = vadd.f32 %v111_v22, %v43_v18  ;;  %v453_v31 = vadd.f32 %v107_v23, %v42_v19  ;;  %v115_v32 = vrot.slane %v98_v24, %v102_v9 }
  0x2c   :  { %150 = vadd.xlane.f32.xlu0 %v149_v29  ;;  %v465_v41 = vadd.f32 %v123_v34, %v46_v33  ;;  %v161_v43 = vsel %vm148_vm0, %v461_v39, 0.0  ;;  %v173_v44 = vmul.f32 %v447_v21, %v447_v21  ;;  %v131_v49 = vrot.slane %v99_v42, %v102_v9 }
  0x2d   :  { %v155_v36 = vsel %vm148_vm0, %v451_v30, 0.0  ;;  %v152_v37 = vsel %vm148_vm0, %v453_v31, 0.0  ;;  %v459_v38 = vadd.f32 %v115_v32, %v44_v25  ;;  %v174_v48 = vmul.f32 %v453_v31, %v453_v31 }
  0x2e   :  { %156 = vadd.xlane.f32.xlu1 %v155_v36  ;;  %v164_v47 = vsel %vm148_vm0, %v465_v41, 0.0  ;;  %v181_v51 = vsel %vm148_vm0, %v173_v44, 0.0  ;;  %v476_v52 = vadd.f32 %v127_v45, %v47_v46  ;;  %v479_v54 = vadd.f32 %v131_v49, %v48_v50 }
  0x2f   :  { %v158_v40 = vsel %vm148_vm0, %v459_v38, 0.0  ;;  %v184_v53 = vsel %vm148_vm0, %v174_v48, 0.0  ;;  %v175_v56 = vmul.f32 %v451_v30, %v451_v30  ;;  %v176_v58 = vmul.f32 %v459_v38, %v459_v38 }
  0x30   :  { %153 = vadd.xlane.f32.xlu0 %v152_v37  ;;  %v167_v55 = vsel %vm148_vm0, %v476_v52, 0.0  ;;  %v170_v57 = vsel %vm148_vm0, %v479_v54, 0.0  ;;  %v177_v60 = vmul.f32 %v461_v39, %v461_v39  ;;  %v178_v62 = vmul.f32 %v465_v41, %v465_v41 }
  0x31   :  { %v187_v59 = vsel %vm148_vm0, %v175_v56, 0.0  ;;  %v190_v61 = vsel %vm148_vm0, %v176_v58, 0.0  ;;  %v179_v0 = vmul.f32 %v476_v52, %v476_v52  ;;  %v180_v2 = vmul.f32 %v479_v54, %v479_v54 }
  0x32   :  { %159 = vadd.xlane.f32.xlu1 %v158_v40  ;;  %v193_v63 = vsel %vm148_vm0, %v177_v60, 0.0  ;;  %v196_v1 = vsel %vm148_vm0, %v178_v62, 0.0 }
  0x33   :  { %v199_v3 = vsel %vm148_vm0, %v179_v0, 0.0  ;;  %v202_v4 = vsel %vm148_vm0, %v180_v2, 0.0 }
  0x34   :  { %162 = vadd.xlane.f32.xlu0 %v161_v43 }
  0x36   :  { %165 = vadd.xlane.f32.xlu1 %v164_v47 }
  0x38   :  { %182 = vadd.xlane.f32.xlu0 %v181_v51 }
  0x3a   :  { %185 = vadd.xlane.f32.xlu1 %v184_v53 }
  0x3c   :  { %168 = vadd.xlane.f32.xlu0 %v167_v55 }
  0x3e   :  { %171 = vadd.xlane.f32.xlu1 %v170_v57 }
  0x40   :  { %188 = vadd.xlane.f32.xlu0 %v187_v59 }
  0x42   :  { %191 = vadd.xlane.f32.xlu1 %v190_v61 }
  0x44   :  { %194 = vadd.xlane.f32.xlu0 %v193_v63 }
  0x46   :  { %197 = vadd.xlane.f32.xlu1 %v196_v1 }
  0x48   :  { %200 = vadd.xlane.f32.xlu0 %v199_v3 }
  0x4a   :  { %203 = vadd.xlane.f32.xlu1 %v202_v4 }
  0xb5   :  { %v151_v5 = vpop.xlane.xlu0 %150 }
  0xb6   :  { %v205_v10 = vmul.f32 0.03125, %v151_v5  ;;  %v321_v5 = vld [vmem:[%s568_s2] ss:$0 sm:$0xff] }
  0xb7   :  { %v157_v6 = vpop.xlane.xlu1 %156 }
  0xb8   :  { %v221_v14 = vmul.f32 %v205_v10, %v205_v10  ;;  %v507_v22 = vmul.f32 0.03125, %v157_v6  ;;  %v255_v61 = vsub.f32 %v447_v21, %v205_v10 }
  0xb9   :  { %v154_v7 = vpop.xlane.xlu0 %153 }
  0xba   :  { %v503_v12 = vmul.f32 0.03125, %v154_v7  ;;  %v223_v29 = vmul.f32 %v507_v22, %v507_v22 }
  0xbb   :  { %v160_v8 = vpop.xlane.xlu1 %159 }
  0xbc   :  { %v222_v17 = vmul.f32 %v503_v12, %v503_v12  ;;  %v509_v26 = vmul.f32 0.03125, %v160_v8  ;;  %v256_v4 = vsub.f32 %v453_v31, %v503_v12  ;;  %v257_v31 = vsub.f32 %v451_v30, %v507_v22 }
  0xbd   :  { %v163_v9 = vpop.xlane.xlu0 %162 }
  0xbe   :  { %v513_v32 = vmul.f32 0.03125, %v163_v9  ;;  %v224_v36 = vmul.f32 %v509_v26, %v509_v26  ;;  %v322_v9 = vld [vmem:[%s568_s2 + $0x1] ss:$0 sm:$0xff]  ;;  %s417_s2 = smov [#allocation7]  }
  0xbf   :  { %v166_v11 = vpop.xlane.xlu1 %165  ;;  %s308_s26 = sshll.u32 %s417_s2, 4  ;;  %s309_s26 = int_to_ptr.vmem [resolvable:$true] %s308_s26 }
  0xc0   :  { %v515_v34 = vmul.f32 0.03125, %v166_v11  ;;  %v225_v44 = vmul.f32 %v513_v32, %v513_v32  ;;  %s386_s27 = scalar_lea.vmem %s309_s26, 256  ;;  %p391_p11 = scmp.lt.s32.totalorder %s309_s26, %s309_s26 }
  0xc1   :  { %v183_v13 = vpop.xlane.xlu0 %182  ;;  %p387_p10 = scmp.ne.s32.totalorder %s309_s26, %s386_s27  ;;  %p392_p12 = scmp.lt.s32.totalorder %s386_s27, %s386_s27 }
  0xc2   :  { %v213_v15 = vmul.f32 0.03125, %v183_v13  ;;  %v226_v48 = vmul.f32 %v515_v34, %v515_v34  ;;  %v260_v30 = vsub.f32 %v465_v41, %v515_v34 }
  0xc3   :  { %v186_v16 = vpop.xlane.xlu1 %185  ;;  %p393_p13 = por %p392_p12, %p391_p11 }
  0xc4   :  { %v229_v18 = vsub.f32 %v213_v15, %v221_v14  ;;  %v214_v19 = vmul.f32 0.03125, %v186_v16 }
  0xc5   :  { %v169_v20 = vpop.xlane.xlu0 %168  ;;  %p394_p0 = pnand %p393_p13, %p387_p10 }
  0xc6   :  { %v237_v23 = vadd.f32 1e-05, %v229_v18  ;;  %v230_v24 = vsub.f32 %v214_v19, %v222_v17  ;;  %v519_v42 = vmul.f32 0.03125, %v169_v20  ;;  %v258_v17 = vsub.f32 %v459_v38, %v509_v26 }
  0xc7   :  { %v172_v25 = vpop.xlane.xlu1 %171  ;;  %v259_v20 = vsub.f32 %v461_v39, %v513_v32 }
  0xc8   :  { %330 = vrsqrt.f32 %v237_v23  ;;  %v238_v27 = vadd.f32 1e-05, %v230_v24  ;;  %v525_v49 = vmul.f32 0.03125, %v172_v25  ;;  %v227_v56 = vmul.f32 %v519_v42, %v519_v42 }
  0xc9   :  { %v189_v28 = vpop.xlane.xlu0 %188  ;;  %v261_v38 = vsub.f32 %v476_v52, %v519_v42 }
  0xca   :  { %332 = vrsqrt.f32 %v238_v27  ;;  %v215_v33 = vmul.f32 0.03125, %v189_v28  ;;  %v228_v62 = vmul.f32 %v525_v49, %v525_v49  ;;  %v262_v39 = vsub.f32 %v479_v54, %v525_v49 }
  0xcb   :  { %v192_v35 = vpop.xlane.xlu1 %191 }
  0xcc   :  { %v231_v37 = vsub.f32 %v215_v33, %v223_v29  ;;  %v216_v40 = vmul.f32 0.03125, %v192_v35 }
  0xcd   :  { %v195_v43 = vpop.xlane.xlu0 %194 }
  0xce   :  { %v239_v45 = vadd.f32 1e-05, %v231_v37  ;;  %v232_v46 = vsub.f32 %v216_v40, %v224_v36  ;;  %v217_v47 = vmul.f32 0.03125, %v195_v43 }
  0xcf   :  { %v198_v50 = vpop.xlane.xlu1 %197 }
  0xd0   :  { %334 = vrsqrt.f32 %v239_v45  ;;  %v240_v51 = vadd.f32 1e-05, %v232_v46  ;;  %v233_v53 = vsub.f32 %v217_v47, %v225_v44  ;;  %v218_v55 = vmul.f32 0.03125, %v198_v50 }
  0xd1   :  { %v201_v57 = vpop.xlane.xlu0 %200 }
  0xd2   :  { %336 = vrsqrt.f32 %v240_v51  ;;  %v241_v58 = vadd.f32 1e-05, %v233_v53  ;;  %v234_v59 = vsub.f32 %v218_v55, %v226_v48  ;;  %v219_v60 = vmul.f32 0.03125, %v201_v57 }
  0xd3   :  { %v204_v63 = vpop.xlane.xlu1 %203 }
  0xd4   :  { %338 = vrsqrt.f32 %v241_v58  ;;  %v242_v0 = vadd.f32 1e-05, %v234_v59  ;;  %v235_v1 = vsub.f32 %v219_v60, %v227_v56  ;;  %v220_v2 = vmul.f32 0.03125, %v204_v63 }
  0xd5   :  { %v331_v3 = vpop.eup %330 }
  0xd6   :  { %v263_v6 = vmul.f32 %v331_v3, %v255_v61  ;;  %340 = vrsqrt.f32 %v242_v0  ;;  %v243_v7 = vadd.f32 1e-05, %v235_v1  ;;  %v236_v21 = vsub.f32 %v220_v2, %v228_v62 }
  0xd7   :  { %v333_v8 = vpop.eup %332 }
  0xd8   :  { %v275_v10 = vmul.f32 %v321_v5, %v263_v6  ;;  %v264_v11 = vmul.f32 %v333_v8, %v256_v4  ;;  %342 = vrsqrt.f32 %v243_v7  ;;  %v244_v13 = vadd.f32 1e-05, %v236_v21 }
  0xda   :  { %v287_v14 = vadd.f32 %v322_v9, %v275_v10  ;;  %v276_v15 = vmul.f32 %v321_v5, %v264_v11  ;;  %344 = vrsqrt.f32 %v244_v13 }
  0xdc   :  { %295 = vst.msk [vmem:[#allocation7] sm:$0x3] %vm148_vm0, %v287_v14  ;;  %v288_v12 = vadd.f32 %v322_v9, %v276_v15 }
  0xdd   :  { %v335_v16 = vpop.eup %334 }
  0xde   :  { %296 = vst.msk [vmem:[#allocation7 + $0x2] sm:$0x3] %vm148_vm0, %v288_v12  ;;  %v265_v18 = vmul.f32 %v335_v16, %v257_v31 }
  0xdf   :  { %v337_v19 = vpop.eup %336 }
  0xe0   :  { %v277_v23 = vmul.f32 %v321_v5, %v265_v18  ;;  %v266_v24 = vmul.f32 %v337_v19, %v258_v17 }
  0xe1   :  { %v339_v25 = vpop.eup %338 }
  0xe2   :  { %v289_v22 = vadd.f32 %v322_v9, %v277_v23  ;;  %v278_v27 = vmul.f32 %v321_v5, %v266_v24  ;;  %v267_v28 = vmul.f32 %v339_v25, %v259_v20 }
  0xe3   :  { %v341_v29 = vpop.eup %340 }
  0xe4   :  { %297 = vst.msk [vmem:[#allocation7 + $0x4] sm:$0x3] %vm148_vm0, %v289_v22  ;;  %v290_v26 = vadd.f32 %v322_v9, %v278_v27  ;;  %v279_v33 = vmul.f32 %v321_v5, %v267_v28  ;;  %v268_v35 = vmul.f32 %v341_v29, %v260_v30 }
  0xe5   :  { %v343_v36 = vpop.eup %342 }
  0xe6   :  { %298 = vst.msk [vmem:[#allocation7 + $0x6] sm:$0x3] %vm148_vm0, %v290_v26  ;;  %v291_v32 = vadd.f32 %v322_v9, %v279_v33  ;;  %v280_v41 = vmul.f32 %v321_v5, %v268_v35  ;;  %v269_v34 = vmul.f32 %v343_v36, %v261_v38 }
  0xe7   :  { %v345_v37 = vpop.eup %344 }
  0xe8   :  { %299 = vst.msk [vmem:[#allocation7 + $0x8] sm:$0x3] %vm148_vm0, %v291_v32  ;;  %v292_v40 = vadd.f32 %v322_v9, %v280_v41  ;;  %v281_v43 = vmul.f32 %v321_v5, %v269_v34  ;;  %v270_v52 = vmul.f32 %v345_v37, %v262_v39 }
  0xea   :  { %300 = vst.msk [vmem:[#allocation7 + $0xa] sm:$0x3] %vm148_vm0, %v292_v40  ;;  %v293_v42 = vadd.f32 %v322_v9, %v281_v43  ;;  %v282_v44 = vmul.f32 %v321_v5, %v270_v52 }
  0xec   :  { %301 = vst.msk [vmem:[#allocation7 + $0xc] sm:$0x3] %vm148_vm0, %v293_v42  ;;  %v294_v54 = vadd.f32 %v322_v9, %v282_v44 }
  0xee   :  { %302 = vst.msk [vmem:[#allocation7 + $0xe] sm:$0x3] %vm148_vm0, %v294_v54 }
  0xef   :  { %397 = shalt.err (!%p394_p0)
}
  0xf0   :  { %314 = dma.vmem_to_hbm [thread:$0]  %s309_s26, 256, %s569_s3, [#allocation4], %s413_s15, %s413_s15, %s414_s16  }
  0xf1   :  { %410 = dma.done.wait [#allocation4], 256  }
  0xf2   :  { %411 = vsyncadd [#allocation4], 4294967040 }
  0xf3   :  { %318 = vsyncpa [#allocation3], 1 }
  0xf4   :  { %319 = vsyncpa [#allocation6], 1 }
  0xf5   :  { %320 = vsyncpa [#allocation4], 1 }

</bundles_post_ra>
